<compile_context>
chip_gen: v7x
topology: tpu7x:2x2x1
jax: 0.10.0
libtpu: 0.0.40
codegen_flags: <defaults>
</compile_context>

<pallas_src>
import math
import jax
import jax.numpy as jnp
from jax.experimental import pallas as pl
from jax.experimental.pallas import tpu as pltpu


def _add_time_embed_kernel(x_ref, emb_ref, o_ref):
    # x_ref / o_ref: (tile_r, tile_hw) in x.dtype; emb_ref: (tile_r, 1) f32.
    # Add in f32, cast on store (exact no-op for f32 inputs).
    o_ref[...] = (x_ref[...].astype(jnp.float32) + emb_ref[...]).astype(o_ref.dtype)


def _round_up(v, m):
    return ((v + m - 1) // m) * m


def _sublane_multiple(dtype):
    # Sub-32-bit dtypes pack along sublanes; match the packed tile.
    bits = jnp.dtype(dtype).itemsize * 8
    if bits >= 32:
        return 8
    if bits == 16:
        return 16
    return 32


def _chip_defaults():
    """(block_bytes_budget, lane_cap, vmem_limit_bytes) per chip generation."""
    try:
        kind = jax.devices()[0].device_kind.lower()
    except Exception:
        kind = ""
    if "v7" in kind:
        # Bigger blocks amortize per-step overhead at 3.2 TB/s; explicitly allow
        # ~2*(4+4) MiB of double-buffered in+out (still far under 64 MiB VMEM).
        return 4 * 1024 * 1024, 4096, 20 << 20
    # v5e/v6e: 2 MiB blocks already sit at ~85% of roofline and fit the default
    # scoped VMEM (16 / 32 MiB) with double-buffering.
    return 2 * 1024 * 1024, 2048, None


def _pick_tiles(rows, hw, dtype, block_bytes_budget, lane_cap):
    """Padded (tile_r, tile_hw): multiples of (sublane_pack, 128); edge blocks
    are masked by the pl.cdiv grid.  Ensures >=2 blocks on a parallel axis when
    the problem is large enough, so both v7x TensorCores share the stream."""
    itemsize = jnp.dtype(dtype).itemsize
    sub = _sublane_multiple(dtype)

    # Lane (spatial) tile: multiple of 128, capped.
    tile_hw = min(_round_up(hw, 128), lane_cap)
    # Sublane (row) tile: multiple of `sub`, capped by the per-block budget.
    budget_rows = max(sub, (block_bytes_budget // (tile_hw * itemsize)) // sub * sub)
    tile_r = min(_round_up(rows, sub), budget_rows)

    # Megacore guarantee: split one parallel axis if everything fits one block
    # but the problem is big enough that splitting is worthwhile (> ~2 MiB).
    problem_bytes = rows * hw * itemsize
    if (pl.cdiv(rows, tile_r) == 1 and pl.cdiv(hw, tile_hw) == 1
            and problem_bytes > 2 * 1024 * 1024):
        if rows > sub:
            tile_r = max(sub, _round_up((rows + 1) // 2, sub))
            if tile_r >= rows:           # still one block -> fall back to hw split
                tile_r = min(_round_up(rows, sub), budget_rows)
                if hw > 128:
                    tile_hw = max(128, _round_up((hw + 1) // 2, 128))
        elif hw > 128:
            tile_hw = max(128, _round_up((hw + 1) // 2, 128))

    return tile_r, tile_hw


def _time_mlp(t, w1, b1, w2, b2):
    # Exact erf-GELU matches torch.nn.GELU() default.  Kept in f32.
    h = jnp.dot(t, w1, preferred_element_type=jnp.float32) + b1
    h = 0.5 * h * (1.0 + jax.lax.erf(h * (1.0 / math.sqrt(2.0))))
    return jnp.dot(h, w2, preferred_element_type=jnp.float32) + b2  # (B, C) f32


def time_embedding(x, t, w1, b1, w2, b2, *,
                   force_pallas=False, donate_x=False,
                   small_problem_bytes=1 << 20):
    """x: (B, C, H, W) NCHW, t: (B, T). Returns (B, C, H, W)."""
    B, C, H, W = x.shape
    HW = H * W
    rows = B * C
    itemsize = jnp.dtype(x.dtype).itemsize

    emb = _time_mlp(t, w1, b1, w2, b2)                 # (B, C) f32

    # Small-problem fast path: pallas launch overhead + fusion barrier dominate.
    if (rows * HW * itemsize < small_problem_bytes) and not force_pallas:
        return (x.astype(jnp.float32) + emb[:, :, None, None]).astype(x.dtype)

    emb2d = emb.reshape(rows, 1)                       # (B*C, 1) f32
    x2d = x.reshape(rows, HW)                          # free reshape of NCHW

    block_budget, lane_cap, vmem_limit = _chip_defaults()
    tile_r, tile_hw = _pick_tiles(rows, HW, x.dtype, block_budget, lane_cap)
    grid = (pl.cdiv(rows, tile_r), pl.cdiv(HW, tile_hw))   # hw axis innermost:
    # emb block index is constant along it -> the (tile_r, 1) embedding stays
    # resident instead of being re-DMA'd each spatial tile.  Do not reorder.

    out2d = pl.pallas_call(
        _add_time_embed_kernel,
        out_shape=jax.ShapeDtypeStruct((rows, HW), x.dtype),
        grid_spec=pltpu.PrefetchScalarGridSpec(
            num_scalar_prefetch=0,
            grid=grid,
            in_specs=[
                pl.BlockSpec((tile_r, tile_hw), lambda r, s: (r, s)),  # x tile
                pl.BlockSpec((tile_r, 1), lambda r, s: (r, 0)),        # emb rows
            ],
            out_specs=pl.BlockSpec((tile_r, tile_hw), lambda r, s: (r, s)),
        ),
        compiler_params=pltpu.CompilerParams(
            dimension_semantics=("parallel", "parallel"),
            vmem_limit_bytes=vmem_limit),
        cost_estimate=pl.CostEstimate(
            flops=rows * HW,
            transcendentals=0,
            bytes_accessed=2 * rows * HW * itemsize + rows * 4),
        input_output_aliases=({0: 0} if donate_x else {}),
    )(x2d, emb2d)

    return out2d.reshape(B, C, H, W)


def _reference(x, t, w1, b1, w2, b2):
    h = t @ w1 + b1
    h = 0.5 * h * (1.0 + jax.lax.erf(h / jnp.sqrt(2.0)))
    emb = h @ w2 + b2
    return x + emb[:, :, None, None]


if __name__ == "__main__":
    key = jax.random.PRNGKey(0)

    # --- test 1: module-consistent small shapes (forces the Pallas path). ---
    B, C, T, H, W = 2, 4, 8, 16, 16
    kx, kt, kw1, kb1, kw2, kb2, k2 = jax.random.split(key, 7)

    x = jax.random.normal(kx, (B, C, H, W), dtype=jnp.float32)
    t = jax.random.normal(kt, (B, T), dtype=jnp.float32)

    lim1 = 1.0 / math.sqrt(T)
    lim2 = 1.0 / math.sqrt(C)
    w1 = jax.random.uniform(kw1, (T, C), minval=-lim1, maxval=lim1, dtype=jnp.float32)
    b1 = jax.random.uniform(kb1, (C,), minval=-lim1, maxval=lim1, dtype=jnp.float32)
    w2 = jax.random.uniform(kw2, (C, C), minval=-lim2, maxval=lim2, dtype=jnp.float32)
    b2 = jax.random.uniform(kb2, (C,), minval=-lim2, maxval=lim2, dtype=jnp.float32)

    ref = _reference(x, t, w1, b1, w2, b2)

    out_pallas = jax.block_until_ready(
        time_embedding(x, t, w1, b1, w2, b2, force_pallas=True))
    assert out_pallas.shape == (B, C, H, W)
    assert jnp.allclose(out_pallas, ref, atol=1e-5, rtol=1e-5), "pallas path mismatch"

    out_fast = jax.block_until_ready(time_embedding(x, t, w1, b1, w2, b2))
    assert jnp.allclose(out_fast, ref, atol=1e-5, rtol=1e-5), "fast path mismatch"

    # --- test 2: awkward shapes (rows not /8, HW not /128) -> padded/masked
    #     edge blocks in the Pallas kernel. ---
    B2, C2, H2, W2 = 3, 3, 20, 20
    kx2, kt2 = jax.random.split(k2, 2)
    x2 = jax.random.normal(kx2, (B2, C2, H2, W2), dtype=jnp.float32)
    t2 = jax.random.normal(kt2, (B2, T), dtype=jnp.float32)
    w1b = w1[:, :C2] if C2 <= C else w1
    b1b = b1[:C2]
    w2b = w2[:C2, :C2]
    b2b = b2[:C2]

    ref2 = _reference(x2, t2, w1b, b1b, w2b, b2b)
    out2 = jax.block_until_ready(
        time_embedding(x2, t2, w1b, b1b, w2b, b2b, force_pallas=True))
    assert out2.shape == (B2, C2, H2, W2)
    assert jnp.allclose(out2, ref2, atol=1e-5, rtol=1e-5), "padded-tile path mismatch"

    print("KERNEL_OK")
</pallas_src>

<mosaic_0001>
module attributes {stable_mosaic.version = 11 : i64} {
  func.func @_add_time_embed_kernel(%arg0: i32, %arg1: i32, %arg2: memref<8x256xf32, #tpu.memory_space<vmem>>, %arg3: memref<8x1xf32, #tpu.memory_space<vmem>>, %arg4: memref<8x256xf32, #tpu.memory_space<vmem>>) attributes {dimension_semantics = [#tpu.dimension_semantics<parallel>, #tpu.dimension_semantics<parallel>], iteration_bounds = array<i64: 1, 1>, scalar_prefetch = 0 : i64, scratch_operands = 0 : i64, tpu.core_type = #tpu.core_type<tc>, window_params = [{transform_indices = @transform_0, window_bounds = array<i64: 8, 256>}, {transform_indices = @transform_1, window_bounds = array<i64: 8, 1>}, {transform_indices = @transform_2, window_bounds = array<i64: 8, 256>}]} {
    %c0 = arith.constant 0 : index
    %c0_0 = arith.constant 0 : index
    %0 = vector.load %arg2[%c0, %c0_0] : memref<8x256xf32, #tpu.memory_space<vmem>>, vector<8x256xf32>
    %c0_1 = arith.constant 0 : index
    %c0_2 = arith.constant 0 : index
    %1 = vector.load %arg3[%c0_1, %c0_2] : memref<8x1xf32, #tpu.memory_space<vmem>>, vector<8x1xf32>
    %2 = vector.broadcast %1 : vector<8x1xf32> to vector<8x256xf32>
    %3 = arith.addf %0, %2 : vector<8x256xf32>
    %c0_3 = arith.constant 0 : index
    %c0_4 = arith.constant 0 : index
    %4 = vector.load %arg4[%c0_3, %c0_4] : memref<8x256xf32, #tpu.memory_space<vmem>>, vector<8x256xf32>
    tpu.vector_store %arg4[%c0_3, %c0_4], %3 {strides = array<i32>} : memref<8x256xf32, #tpu.memory_space<vmem>>, vector<8x256xf32>,
    return
  }
  func.func @transform_0(%arg0: i32, %arg1: i32) -> (i32, i32) {
    %c0_i32 = arith.constant 0 : i32
    return %arg0, %arg1 : i32, i32
  }
  func.func @transform_1(%arg0: i32, %arg1: i32) -> (i32, i32) {
    %c0_i32 = arith.constant 0 : i32
    %c0_i32_0 = arith.constant 0 : i32
    return %arg0, %c0_i32 : i32, i32
  }
  func.func @transform_2(%arg0: i32, %arg1: i32) -> (i32, i32) {
    %c0_i32 = arith.constant 0 : i32
    return %arg0, %arg1 : i32, i32
  }
}

</mosaic_0001>

<bundles_post_ra>
// kernel: tpu_custom_call.1
= control target key start
LH: loop header
LB: loop body
LE: loop exit
PB: predicated region body
PF: predicated region fallthrough
CT: control target
= control target key end

     0   :  { %7 = vsyncpa [#allocation3], 0  ;;  %s148_s0 = inlined_call_operand.hbm [shape: f32[8,256], index: 0, kind: input, shape index: {}]   ;;  %s149_s1 = inlined_call_operand.vmem [shape: f32[8,1], index: 1, kind: input, shape index: {}]   ;;  %s150_s2 = inlined_call_operand.hbm [shape: f32[8,256], index: 2, kind: output, shape index: {}]  }
   0x1   :  { %8 = vsyncpa [#allocation4], 0  ;;  %s103_s9 = smov [#allocation2]   ;;  %s55_s13 = scalar_lea.hbm %s148_s0, 256 }
   0x2   :  { %s15_s10 = sshll.u32 %s103_s9, 4  ;;  %p56_p0 = scmp.ne.s32.totalorder %s148_s0, %s55_s13  ;;  %s16_s10 = int_to_ptr.vmem [resolvable:$true] %s15_s10 }
   0x3   :  { %p59_p1 = scmp.lt.u32.totalorder %s55_s13, %s148_s0 }
   0x5   :  { %p61_p2 = pnand %p59_p1, %p56_p0 }
   0x7   :  { %64 = shalt.err (!%p61_p2)
}
   0x8   :  { %s65_s18 = scalar_lea.vmem %s16_s10, 256  ;;  %p70_p4 = scmp.lt.s32.totalorder %s16_s10, %s16_s10 }
   0x9   :  { %p66_p3 = scmp.ne.s32.totalorder %s16_s10, %s65_s18  ;;  %p71_p5 = scmp.lt.s32.totalorder %s65_s18, %s65_s18 }
   0xb   :  { %p72_p6 = por %p71_p5, %p70_p4 }
   0xd   :  { %p73_p7 = pnand %p72_p6, %p66_p3 }
   0xf   :  { %76 = shalt.err (!%p73_p7)
}
  0x10   :  { %18 = dma.hbm_to_vmem [thread:$0]  %s148_s0, 256, %s16_s10, [#allocation3]  }
  0x11   :  { %99 = dma.done.wait [#allocation3], 256  }
  0x12   :  { %100 = vsyncadd [#allocation3], 4294967040  ;;  %v104_v0 = vmov 0   ;;  %v26_v1 = vld [vmem:[%s149_s1] sm:$0xff]  ;;  %v25_v3 = vld [vmem:[#allocation2 + $0x8] sm:$0xff]  ;;  %s105_s23 = smov [#allocation5]  }
  0x13   :  { %54 = vset.pattern.permute.xlu0 %v104_v0  ;;  %v24_v2 = vld [vmem:[#allocation2] sm:$0xff]  ;;  %s42_s24 = sshll.u32 %s105_s23, 4  ;;  %s43_s24 = int_to_ptr.vmem [resolvable:$true] %s42_s24 }
  0x14   :  { %29 = vperm.xlu0 %54, %v26_v1   ;;  %s77_s0 = scalar_lea.vmem %s43_s24, 256  ;;  %p82_p9 = scmp.lt.s32.totalorder %s43_s24, %s43_s24 }
  0x15   :  { %p78_p8 = scmp.ne.s32.totalorder %s43_s24, %s77_s0  ;;  %p83_p10 = scmp.lt.s32.totalorder %s77_s0, %s77_s0 }
  0x17   :  { %p84_p11 = por %p83_p10, %p82_p9 }
  0x19   :  { %p85_p12 = pnand %p84_p11, %p78_p8 }
  0x93   :  { %v30_v4 = vpop.permute.xlu0 %29 }
  0x94   :  { %v32_v5 = vadd.f32 %v30_v4, %v24_v2  ;;  %v33_v6 = vadd.f32 %v30_v4, %v25_v3 }
  0x96   :  { %34 = vst [vmem:[#allocation5] sm:$0xff] %v32_v5  ;;  %35 = vst [vmem:[#allocation5 + $0x8] sm:$0xff] %v33_v6 }
  0x97   :  { %88 = shalt.err (!%p85_p12)
}
  0x98   :  { %s89_s26 = scalar_lea.hbm %s150_s2, 256 }
  0x99   :  { %p90_p13 = scmp.ne.s32.totalorder %s150_s2, %s89_s26  ;;  %p93_p0 = scmp.lt.u32.totalorder %s89_s26, %s150_s2 }
  0x9b   :  { %p95_p1 = pnand %p93_p0, %p90_p13 }
  0x9d   :  { %98 = shalt.err (!%p95_p1)
}
  0x9e   :  { %45 = dma.vmem_to_hbm [thread:$0]  %s43_s24, 256, %s150_s2, [#allocation4]  }
  0x9f   :  { %101 = dma.done.wait [#allocation4], 256  }
  0xa0   :  { %102 = vsyncadd [#allocation4], 4294967040 }
  0xa1   :  { %49 = vsyncpa [#allocation3], 1 }
  0xa2   :  { %50 = vsyncpa [#allocation4], 1 }

</bundles_post_ra>
